<compile_context>
chip_gen: v6e
topology: v6e:2x2x1
jax: 0.10.0
libtpu: 0.0.40
codegen_flags: <defaults>
</compile_context>

<pallas_src>
import jax
import jax.numpy as jnp
from jax.experimental import pallas as pl
from jax.experimental.pallas import tpu as pltpu


def _round_up(x: int, m: int) -> int:
    return ((x + m - 1) // m) * m


def _pick_tile(dim: int, max_tile: int, align: int, waste_frac: float = 0.15) -> int:
    """Largest tile (multiple of `align`, <= max_tile) keeping padding waste small."""
    dim_al = _round_up(dim, align)
    max_tile = max(align, (max_tile // align) * align)
    if dim_al <= max_tile:
        return dim_al                      # whole (aligned) dim in one block, no extra waste
    best = align
    for t in range(align, max_tile + 1, align):
        if _round_up(dim, t) - dim_al <= waste_frac * dim_al:
            best = t                       # largest tile under the waste budget
    return best


def _pick_k_tile(k: int, max_tk: int) -> int:
    k_al = _round_up(k, 128)
    if k_al <= max_tk:
        return k_al                        # single K step: minimal zero-padding
    # Multi-step reduction: 256-aligned strips match v6e/v7x 256-wide MXU passes.
    return _pick_tile(k, max_tk, 256)


# --------------------------------------------------------------------------------
# Kernels
# --------------------------------------------------------------------------------
def _linear_kernel_direct(x_ref, w_ref, b_ref, o_ref):
    """K-reduction matmul; the f32 output block itself is the accumulator
    (its BlockSpec revisits (i, j) across the K axis). Bias added once at k==0."""
    @pl.when(pl.program_id(2) == 0)
    def _init():
        o_ref[...] = jnp.broadcast_to(b_ref[...], o_ref.shape)

    o_ref[...] += jnp.dot(x_ref[...], w_ref[...],
                          preferred_element_type=jnp.float32)


def _linear_kernel_acc(x_ref, w_ref, b_ref, o_ref, acc_ref):
    """Same contraction, but with an f32 scratch accumulator for low-precision
    (e.g. bf16) outputs; cast to the output dtype only on the last K step."""
    k = pl.program_id(2)

    @pl.when(k == 0)
    def _init():
        acc_ref[...] = jnp.broadcast_to(b_ref[...], acc_ref.shape)

    acc_ref[...] += jnp.dot(x_ref[...], w_ref[...],
                            preferred_element_type=jnp.float32)

    @pl.when(k == pl.num_programs(2) - 1)
    def _finalize():
        o_ref[...] = acc_ref[...].astype(o_ref.dtype)


# --------------------------------------------------------------------------------
# Wrapper
# --------------------------------------------------------------------------------
def init_linear_params(key, inp_dim, out_dim, dtype=jnp.float32):
    """Deterministic init mimicking nn.Linear: U(-1/sqrt(inpDim), 1/sqrt(inpDim))."""
    kw, kb = jax.random.split(key)
    bound = 1.0 / (inp_dim ** 0.5)
    weight = jax.random.uniform(kw, (out_dim, inp_dim), dtype, -bound, bound)
    bias = jax.random.uniform(kb, (out_dim,), dtype, -bound, bound)
    return weight, bias


def prepare_linear_params(weight, bias, *, tn=512, tk=1024,
                          compute_dtype=jnp.bfloat16):
    """One-time layout prep (do this at parameter-init time, NOT per call):
    W is transposed to (inpDim, outDim), zero-padded to tile multiples and cast
    to the MXU compute dtype; bias is kept f32 and padded along N."""
    n, k = weight.shape
    tn_e = _pick_tile(n, tn, 128)
    tk_e = _pick_k_tile(k, tk)
    n_p = _round_up(n, tn_e)
    k_p = _round_up(k, tk_e)

    w_t = weight.T
    if w_t.dtype != compute_dtype:
        w_t = w_t.astype(compute_dtype)
    if (k_p, n_p) != (k, n):
        w_t = jnp.pad(w_t, ((0, k_p - k), (0, n_p - n)))   # K pad MUST be zeros

    b_p = bias.astype(jnp.float32).reshape(1, n)
    if n_p != n:
        b_p = jnp.pad(b_p, ((0, 0), (0, n_p - n)))

    return dict(w=w_t, b=b_p, n=n, k=k, n_p=n_p, k_p=k_p,
                tn_e=tn_e, tk_e=tk_e, compute_dtype=compute_dtype)


def linear_forward(x, params, *, tm=512, out_dtype=None):
    """y = x @ W^T + b with pre-laid-out params from prepare_linear_params()."""
    m, k = x.shape
    assert k == params["k"], (x.shape, params["k"])
    n, n_p, k_p = params["n"], params["n_p"], params["k_p"]
    tk_e = params["tk_e"]
    compute_dtype = params["compute_dtype"]
    out_dtype = jnp.dtype(out_dtype if out_dtype is not None else x.dtype)

    tm_e = _pick_tile(m, tm, 8)
    m_p = _round_up(m, tm_e)

    # v7x megacore: make sure >=2 blocks exist along the parallel axes when the
    # batch is small, otherwise one TensorCore idles (no effect on v5e/v6e).
    tn_e = params["tn_e"]
    if m_p // tm_e == 1 and n_p // tn_e == 1 and tn_e % 256 == 0:
        tn_e //= 2

    # Cast / pad x only when actually needed (single fused pass if both).
    x_in = x if x.dtype == compute_dtype else x.astype(compute_dtype)
    if (m_p, k_p) != (m, k):
        x_in = jnp.pad(x_in, ((0, m_p - m), (0, k_p - k)))  # K pad MUST be zeros

    grid = (m_p // tm_e, n_p // tn_e, k_p // tk_e)
    direct = out_dtype == jnp.float32
    kernel = _linear_kernel_direct if direct else _linear_kernel_acc
    scratch = [] if direct else [pltpu.VMEM((tm_e, tn_e), jnp.float32)]

    # VMEM budget: double-buffered operand/output tiles + (optional) f32 scratch.
    in_bytes = jnp.dtype(compute_dtype).itemsize
    vmem_needed = (2 * (tm_e * tk_e + tk_e * tn_e) * in_bytes
                   + 2 * tm_e * tn_e * out_dtype.itemsize
                   + (0 if direct else tm_e * tn_e * 4)
                   + 2 * tn_e * 4)
    vmem_limit = min(48 * 1024 * 1024,
                     max(32 * 1024 * 1024, int(vmem_needed * 1.5)))

    cost = pl.CostEstimate(
        flops=2 * m_p * n_p * k_p,
        bytes_accessed=(m_p * k_p + k_p * n_p) * in_bytes
                       + m_p * n_p * out_dtype.itemsize + n_p * 4,
        transcendentals=0,
    )

    out_p = pl.pallas_call(
        kernel,
        out_shape=jax.ShapeDtypeStruct((m_p, n_p), out_dtype),
        grid_spec=pltpu.PrefetchScalarGridSpec(
            num_scalar_prefetch=0,
            grid=grid,
            in_specs=[
                pl.BlockSpec((tm_e, tk_e), lambda i, j, kk: (i, kk)),
                pl.BlockSpec((tk_e, tn_e), lambda i, j, kk: (kk, j)),
                # Bias blocked only along N: stays VMEM-resident across K.
                pl.BlockSpec((1, tn_e), lambda i, j, kk: (0, j)),
            ],
            out_specs=pl.BlockSpec((tm_e, tn_e), lambda i, j, kk: (i, j)),
            scratch_shapes=scratch,
        ),
        compiler_params=pltpu.CompilerParams(
            dimension_semantics=("parallel", "parallel", "arbitrary"),
            vmem_limit_bytes=vmem_limit,
        ),
        cost_estimate=cost,
    )(x_in, params["w"], params["b"])

    if (m_p, n_p) != (m, n):
        out_p = out_p[:m, :n]
    return out_p


# --------------------------------------------------------------------------------
# Self-test
# --------------------------------------------------------------------------------
if __name__ == "__main__":
    key = jax.random.PRNGKey(0)
    k_demo, k_big = jax.random.split(key)

    # ---- Case 1: the literal Linear_regression demo (inpDim=outDim=1) ----------
    # (launch-overhead bound, but checks exact module semantics; bf16 operands)
    x_demo = jnp.array([[1.0], [2.0], [3.0], [4.0]], dtype=jnp.float32)
    w_demo, b_demo = init_linear_params(k_demo, 1, 1)
    p_demo = prepare_linear_params(w_demo, b_demo)
    y_demo = jax.block_until_ready(linear_forward(x_demo, p_demo))
    y_demo_ref = x_demo @ w_demo.T + b_demo
    assert y_demo.shape == (4, 1)
    assert jnp.allclose(y_demo, y_demo_ref, atol=2e-2, rtol=2e-2), (y_demo, y_demo_ref)

    # ---- Case 2/3: non-aligned layer exercising the full 3-D grid ---------------
    # grid = (1, 3, 3): multi-block N, multi-step K reduction, bias added once.
    batch, in_f, out_f = 16, 1536, 384
    kx, kp = jax.random.split(k_big)
    x_big = jax.random.normal(kx, (batch, in_f), jnp.float32)
    w_big, b_big = init_linear_params(kp, in_f, out_f)
    y_big_ref = jnp.matmul(x_big, w_big.T,
                           precision=jax.lax.Precision.HIGHEST) + b_big

    # Case 2: bf16 operands, bf16 output (f32 scratch-accumulator kernel path).
    p_bf16 = prepare_linear_params(w_big, b_big, tn=128, tk=512)
    y_bf16 = jax.block_until_ready(
        linear_forward(x_big, p_bf16, tm=16, out_dtype=jnp.bfloat16))
    assert y_bf16.shape == (batch, out_f) and y_bf16.dtype == jnp.bfloat16
    err_bf16 = float(jnp.max(jnp.abs(y_bf16.astype(jnp.float32) - y_big_ref)))
    assert jnp.allclose(y_bf16.astype(jnp.float32), y_big_ref,
                        atol=6e-2, rtol=6e-2), err_bf16

    # Case 3: f32 operands, f32 output (direct output-block accumulation path).
    p_f32 = prepare_linear_params(w_big, b_big, tn=128, tk=512,
                                  compute_dtype=jnp.float32)
    y_f32 = jax.block_until_ready(linear_forward(x_big, p_f32, tm=16))
    err_f32 = float(jnp.max(jnp.abs(y_f32 - y_big_ref)))
    assert jnp.allclose(y_f32, y_big_ref, atol=2e-2, rtol=2e-2), err_f32

    print("KERNEL_OK")
</pallas_src>

<mosaic_0001>
module attributes {stable_mosaic.version = 11 : i64} {
  func.func @_linear_kernel_direct(%arg0: i32, %arg1: i32, %arg2: i32, %arg3: memref<8x128xbf16, #tpu.memory_space<vmem>>, %arg4: memref<128x128xbf16, #tpu.memory_space<vmem>>, %arg5: memref<1x128xf32, #tpu.memory_space<vmem>>, %arg6: memref<8x128xf32, #tpu.memory_space<vmem>>) attributes {dimension_semantics = [#tpu.dimension_semantics<parallel>, #tpu.dimension_semantics<parallel>, #tpu.dimension_semantics<arbitrary>], iteration_bounds = array<i64: 1, 1, 1>, scalar_prefetch = 0 : i64, scratch_operands = 0 : i64, tpu.core_type = #tpu.core_type<tc>, window_params = [{transform_indices = @transform_0, window_bounds = array<i64: 8, 128>}, {transform_indices = @transform_1, window_bounds = array<i64: 128, 128>}, {transform_indices = @transform_2, window_bounds = array<i64: 1, 128>}, {transform_indices = @transform_3, window_bounds = array<i64: 8, 128>}]} {
    %c0_i32 = arith.constant 0 : i32
    %0 = arith.cmpi eq, %arg2, %c0_i32 : i32
    %1 = arith.extui %0 : i1 to i32
    %c0_i32_0 = arith.constant 0 : i32
    %2 = arith.cmpi ne, %1, %c0_i32_0 : i32
    scf.if %2 {
      %c0_8 = arith.constant 0 : index
      %c0_9 = arith.constant 0 : index
      %9 = vector.load %arg5[%c0_8, %c0_9] : memref<1x128xf32, #tpu.memory_space<vmem>>, vector<1x128xf32>
      %10 = vector.shape_cast %9 : vector<1x128xf32> to vector<1x128xf32>
      %11 = vector.broadcast %10 : vector<1x128xf32> to vector<8x128xf32>
      %c0_10 = arith.constant 0 : index
      %c0_11 = arith.constant 0 : index
      %12 = vector.load %arg6[%c0_10, %c0_11] : memref<8x128xf32, #tpu.memory_space<vmem>>, vector<8x128xf32>
      tpu.vector_store %arg6[%c0_10, %c0_11], %11 {strides = array<i32>} : memref<8x128xf32, #tpu.memory_space<vmem>>, vector<8x128xf32>,
    } else {
    }
    %c0 = arith.constant 0 : index
    %c0_1 = arith.constant 0 : index
    %3 = vector.load %arg6[%c0, %c0_1] : memref<8x128xf32, #tpu.memory_space<vmem>>, vector<8x128xf32>
    %c0_2 = arith.constant 0 : index
    %c0_3 = arith.constant 0 : index
    %4 = vector.load %arg3[%c0_2, %c0_3] : memref<8x128xbf16, #tpu.memory_space<vmem>>, vector<8x128xbf16>
    %c0_4 = arith.constant 0 : index
    %c0_5 = arith.constant 0 : index
    %5 = vector.load %arg4[%c0_4, %c0_5] : memref<128x128xbf16, #tpu.memory_space<vmem>>, vector<128x128xbf16>
    %cst = arith.constant dense<0.000000e+00> : vector<8x128xf32>
    %6 = tpu.matmul %4, %5, %cst {dimension_numbers = #tpu.dot_dimension_numbers<[1], [0], [0], [1], [0, 0, 1, 1], [], []>} : vector<8x128xbf16>, vector<128x128xbf16>, vector<8x128xf32> -> vector<8x128xf32>
    %7 = arith.addf %3, %6 : vector<8x128xf32>
    %c0_6 = arith.constant 0 : index
    %c0_7 = arith.constant 0 : index
    %8 = vector.load %arg6[%c0_6, %c0_7] : memref<8x128xf32, #tpu.memory_space<vmem>>, vector<8x128xf32>
    tpu.vector_store %arg6[%c0_6, %c0_7], %7 {strides = array<i32>} : memref<8x128xf32, #tpu.memory_space<vmem>>, vector<8x128xf32>,
    return
  }
  func.func @transform_0(%arg0: i32, %arg1: i32, %arg2: i32) -> (i32, i32) {
    %c0_i32 = arith.constant 0 : i32
    return %arg0, %arg2 : i32, i32
  }
  func.func @transform_1(%arg0: i32, %arg1: i32, %arg2: i32) -> (i32, i32) {
    %c0_i32 = arith.constant 0 : i32
    return %arg2, %arg1 : i32, i32
  }
  func.func @transform_2(%arg0: i32, %arg1: i32, %arg2: i32) -> (i32, i32) {
    %c0_i32 = arith.constant 0 : i32
    %c0_i32_0 = arith.constant 0 : i32
    return %c0_i32, %arg1 : i32, i32
  }
  func.func @transform_3(%arg0: i32, %arg1: i32, %arg2: i32) -> (i32, i32) {
    %c0_i32 = arith.constant 0 : i32
    return %arg0, %arg1 : i32, i32
  }
}

</mosaic_0001>

<bundles_post_ra>
// kernel: tpu_custom_call.1
= control target key start
LH: loop header
LB: loop body
LE: loop exit
PB: predicated region body
PF: predicated region fallthrough
CT: control target
= control target key end

     0   :  { %8 = vsyncpa [#allocation3], 0  ;;  %s336_s0 = inlined_call_operand.hbm [shape: bf16[8,128], index: 0, kind: input, shape index: {}]   ;;  %s337_s1 = inlined_call_operand.hbm [shape: bf16[128,128], index: 1, kind: input, shape index: {}]   ;;  %s338_s2 = inlined_call_operand.vmem [shape: f32[1,128], index: 2, kind: input, shape index: {}]   ;;  %s339_s3 = inlined_call_operand.hbm [shape: f32[8,128], index: 3, kind: output, shape index: {}]  }
   0x1   :  { %9 = vsyncpa [#allocation6], 0 }
   0x2   :  { %10 = vsyncpa [#allocation4], 0  ;;  %s297_s12 = smov [#allocation2]   ;;  %s298_s14 = smov [#allocation5]  }
   0x3   :  { %s17_s13 = sshll.u32 %s297_s12, 4  ;;  %s26_s15 = sshll.u32 %s298_s14, 4  ;;  %s18_s13 = int_to_ptr.vmem [resolvable:$true] %s17_s13  ;;  %s27_s15 = int_to_ptr.vmem [resolvable:$true] %s26_s15 }
   0x4   :  { %s239_s16 = scalar_lea.vmem %s18_s13, 64  ;;  %p244_p1 = scmp.lt.s32.totalorder %s18_s13, %s18_s13 }
   0x5   :  { %p240_p0 = scmp.ne.s32.totalorder %s18_s13, %s239_s16  ;;  %p245_p2 = scmp.lt.s32.totalorder %s239_s16, %s239_s16 }
   0x7   :  { %p246_p3 = por %p245_p2, %p244_p1 }
   0x9   :  { %p247_p4 = pnand %p246_p3, %p240_p0 }
   0xb   :  { %250 = shalt.err (!%p247_p4)
}
   0xc   :  { %20 = dma.hbm_to_vmem [thread:$0]  %s336_s0, 64, %s18_s13, [#allocation3]  }
   0xd   :  { %s259_s19 = scalar_lea.vmem %s27_s15, 1024  ;;  %p264_p6 = scmp.lt.s32.totalorder %s27_s15, %s27_s15 }
   0xe   :  { %p260_p5 = scmp.ne.s32.totalorder %s27_s15, %s259_s19  ;;  %p265_p7 = scmp.lt.s32.totalorder %s259_s19, %s259_s19 }
  0x10   :  { %p266_p8 = por %p265_p7, %p264_p6 }
  0x12   :  { %p267_p9 = pnand %p266_p8, %p260_p5 }
  0x14   :  { %270 = shalt.err (!%p267_p9)
}
  0x15   :  { %s299_s20 = smov 64   ;;  %s300_s21 = smov 4  }
  0x16   :  { %32 = dma.hbm_to_vmem [thread:$0]  %s337_s1, 1024, %s27_s15, [#allocation6], %s299_s20, %s299_s20, %s300_s21  }
  0x17   :  { %291 = dma.done.wait [#allocation3], 64  }
  0x18   :  { %292 = vsyncadd [#allocation3], 4294967232 }
  0x19   :  { %293 = dma.done.wait [#allocation6], 1024  }
  0x1a   :  { %294 = vsyncadd [#allocation6], 4294966272  ;;  %v301_v0 = vmov 0.0   ;;  %vm302_vm0 = vmmov 0   ;;  %v223_v1 = vld [vmem:[#allocation5 + $0x38] sm:$0xff]   ;;  %v224_v2 = vld [vmem:[#allocation5 + $0x30] sm:$0xff]  }
  0x1b   :  { %196 = vmatprep.subr.bf16.mxu0 %v301_v0  ;;  %212 = vmatprep.mubr.msk.bf16.mxu0 %vm302_vm0, %v301_v0  ;;  %v225_v3 = vld [vmem:[#allocation5 + $0x28] sm:$0xff]   ;;  %v226_v4 = vld [vmem:[#allocation5 + $0x20] sm:$0xff]   ;;  %v227_v5 = vld [vmem:[#allocation5 + $0x18] sm:$0xff]   ;;  %s303_s24 = smov [#allocation7]  }
  0x1c   :  { %197 = vmatpush3.bf16.msra.mxu0 %v223_v1  ;;  %v228_v6 = vld [vmem:[#allocation5 + $0x10] sm:$0xff]   ;;  %v229_v7 = vld [vmem:[#allocation5 + $0x8] sm:$0xff]   ;;  %v230_v8 = vld [vmem:[#allocation5] sm:$0xff]   ;;  %s168_s25 = sshll.u32 %s303_s24, 4  ;;  %s169_s25 = int_to_ptr.vmem [resolvable:$true] %s168_s25 }
  0x1d   :  { %198 = vmatprep.subr.bf16.mxu0 %v301_v0  ;;  %v55_v9 = vld [vmem:[#allocation2] sm:$0xf]  ;;  %s271_s26 = scalar_lea.vmem %s169_s25, 128  ;;  %p276_p11 = scmp.lt.s32.totalorder %s169_s25, %s169_s25 }
  0x1e   :  { %v178_v10 = vld [vmem:[%s338_s2] ss:$0 sm:$0xff]  ;;  %p272_p10 = scmp.ne.s32.totalorder %s169_s25, %s271_s26  ;;  %p277_p12 = scmp.lt.s32.totalorder %s271_s26, %s271_s26 }
  0x20   :  { %199 = vmatpush3.bf16.msra.mxu0 %v224_v2  ;;  %p278_p13 = por %p277_p12, %p276_p11 }
  0x21   :  { %200 = vmatprep.subr.bf16.mxu0 %v301_v0 }
  0x22   :  { %p279_p0 = pnand %p278_p13, %p272_p10 }
  0x24   :  { %201 = vmatpush3.bf16.msra.mxu0 %v225_v3 }
  0x25   :  { %202 = vmatprep.subr.bf16.mxu0 %v301_v0 }
  0x28   :  { %203 = vmatpush3.bf16.msra.mxu0 %v226_v4 }
  0x29   :  { %204 = vmatprep.subr.bf16.mxu0 %v301_v0 }
  0x2c   :  { %205 = vmatpush3.bf16.msra.mxu0 %v227_v5 }
  0x2d   :  { %206 = vmatprep.subr.bf16.mxu0 %v301_v0 }
  0x30   :  { %207 = vmatpush3.bf16.msra.mxu0 %v228_v6 }
  0x31   :  { %208 = vmatprep.subr.bf16.mxu0 %v301_v0 }
  0x34   :  { %209 = vmatpush3.bf16.msra.mxu0 %v229_v7 }
  0x35   :  { %210 = vmatprep.subr.bf16.mxu0 %v301_v0 }
  0x38   :  { %211 = vmatpush3.bf16.msra.mxu0 %v230_v8 }
  0x3b   :  { %213 = vmatmul.mubr.bf16.vlgmr.msra.gmra.mxu0 %v55_v9 }
  0xfb   :  { %v154_v11 = vpop.f32.mrf.mxu0 }
  0xfc   :  { %v160_v12 = vadd.f32 %v178_v10, %v154_v11 }
  0xfd   :  { %v214_v13 = vpop.f32.mrf.mxu0 }
  0xfe   :  { %161 = vst [vmem:[#allocation7] sm:$0xff] %v160_v12 }
  0xff   :  { %v157_v14 = vpop.f32.mrf.mxu0 }
 0x100   :  { %282 = shalt.err (!%p279_p0)
}
 0x101   :  { %171 = dma.vmem_to_hbm [thread:$0]  %s169_s25, 128, %s339_s3, [#allocation4]   ;;  %v215_v15 = vpop.f32.mrf.mxu0 }
 0x102   :  { %295 = dma.done.wait [#allocation4], 128  }
 0x103   :  { %296 = vsyncadd [#allocation4], 4294967168 }
 0x104   :  { %175 = vsyncpa [#allocation3], 1 }
 0x105   :  { %176 = vsyncpa [#allocation6], 1 }
 0x106   :  { %177 = vsyncpa [#allocation4], 1 }

</bundles_post_ra>
